<compile_context>
chip_gen: v6e
topology: v6e:2x2x1
jax: 0.10.0
libtpu: 0.0.40
codegen_flags: <defaults>
</compile_context>

<pallas_src>
import jax
import jax.numpy as jnp
from jax import lax
from jax.experimental import pallas as pl
from jax.experimental.pallas import tpu as pltpu


def _round_up(a, m):
    return (a + m - 1) // m * m


def _mlp_kernel(x_ref, w1t_ref, b1_ref, w2t_ref, b2_ref, w3r_ref, b3_ref, o_ref):
    """One batch tile of the fused MLP, batch-in-lanes orientation.

    x_ref   : (TM, 51)  input tile (f32 or bf16), matmul dtype
    w1t_ref : (32, 51)  layer-1 weight, transposed, matmul dtype
    b1_ref  : (32, 1)   f32
    w2t_ref : (16, 32)  layer-2 weight, transposed, matmul dtype
    b2_ref  : (16, 1)   f32
    w3r_ref : (8, 16)   layer-3 weight row, sublane-padded to 8 (rows 1..7 = 0)
    b3_ref  : (1, 1)    f32
    o_ref   : (1, TM)   lane-dense output tile (column m = batch row m of tile)
    """
    x = x_ref[...]
    mm = x.dtype  # bf16 input -> bf16 MXU operands, f32 accumulation

    # Layer 1: (32,51) x (TM,51)^T -> (32,TM) on the MXU (NT pattern), f32 acc.
    h1 = lax.dot_general(w1t_ref[...], x, (((1,), (1,)), ((), ())),
                         preferred_element_type=jnp.float32)
    h1 = jnp.maximum(h1 + b1_ref[...], 0.0)                       # (32, TM) f32

    # Layer 2: (16,32) x (32,TM) -> (16,TM), f32 acc.
    h2 = lax.dot_general(w2t_ref[...], h1.astype(mm), (((1,), (0,)), ((), ())),
                         preferred_element_type=jnp.float32)
    h2 = jnp.maximum(h2 + b2_ref[...], 0.0)                       # (16, TM) f32

    # Layer 3: (8,16) x (16,TM) -> (8,TM); row 0 is the real output.
    out8 = lax.dot_general(w3r_ref[...], h2.astype(mm), (((1,), (0,)), ((), ())),
                           preferred_element_type=jnp.float32)    # (8, TM)
    o_ref[...] = (out8[0:1, :] + b3_ref[...]).astype(o_ref.dtype)  # (1, TM)


def responsibility_mlp(x, params, *, tm_max=8192):
    """x: [B, input_dim] (f32 or bf16). params: w1,b1,w2,b2,w3,b3 in [in, out] layout.

    Returns [B, 1] float32.
    """
    assert tm_max % 128 == 0
    B, F = x.shape
    mm_dtype = x.dtype

    # Host-side weight prep: transpose + cast once; biases stay f32 as columns.
    w1t = params["w1"].T.astype(mm_dtype)                      # (32, F)
    b1c = params["b1"].reshape(-1, 1).astype(jnp.float32)      # (32, 1)
    w2t = params["w2"].T.astype(mm_dtype)                      # (16, 32)
    b2c = params["b2"].reshape(-1, 1).astype(jnp.float32)      # (16, 1)
    w3r = jnp.pad(params["w3"].T, ((0, 7), (0, 0))).astype(mm_dtype)  # (8, 16)
    b3c = params["b3"].reshape(1, 1).astype(jnp.float32)       # (1, 1)

    # Balanced batch tiling.
    sub = 16 if mm_dtype == jnp.bfloat16 else 8
    if B <= tm_max:
        TM = _round_up(B, sub)
        num_tiles = 1
    else:
        n = pl.cdiv(B, tm_max)
        TM = _round_up(pl.cdiv(B, n), 128)       # <= tm_max, multiple of 128
        num_tiles = pl.cdiv(B, TM)
    B_pad = TM * num_tiles
    if B_pad != B:
        x = jnp.pad(x, ((0, B_pad - B), (0, 0)))

    # Constant index_map -> block never changes -> DMA'd once, stays resident.
    const = lambda a: pl.BlockSpec(a.shape, lambda i: (0, 0))

    out_row = pl.pallas_call(
        _mlp_kernel,
        out_shape=jax.ShapeDtypeStruct((1, B_pad), jnp.float32),
        grid=(num_tiles,),
        in_specs=[
            pl.BlockSpec((TM, F), lambda i: (i, 0)),   # x: batch-tiled, pipelined
            const(w1t), const(b1c),
            const(w2t), const(b2c),
            const(w3r), const(b3c),
        ],
        out_specs=pl.BlockSpec((1, TM), lambda i: (0, i)),
        compiler_params=pltpu.CompilerParams(
            dimension_semantics=("parallel",),   # shard batch tiles across TCs on v7x
            vmem_limit_bytes=32 << 20,           # v7x-safe (64 MiB physical VMEM)
        ),
    )(x, w1t, b1c, w2t, b2c, w3r, b3c)

    return out_row[0, :B].reshape(B, 1)


def init_params(key, input_dim=51):
    """torch.nn.Linear default init: U(-1/sqrt(fan_in), 1/sqrt(fan_in)).
    Weights stored as [in_features, out_features] (transposed vs. torch)."""
    dims = [(input_dim, 32), (32, 16), (16, 1)]
    params = {}
    for i, (fan_in, fan_out) in enumerate(dims, start=1):
        key, kw, kb = jax.random.split(key, 3)
        bound = 1.0 / (fan_in ** 0.5)
        params[f"w{i}"] = jax.random.uniform(
            kw, (fan_in, fan_out), jnp.float32, minval=-bound, maxval=bound)
        params[f"b{i}"] = jax.random.uniform(
            kb, (1, fan_out), jnp.float32, minval=-bound, maxval=bound)
    return params


def responsibility_mlp_ref(x, params):
    h1 = jnp.maximum(x @ params["w1"] + params["b1"], 0.0)
    h2 = jnp.maximum(h1 @ params["w2"] + params["b2"], 0.0)
    return h2 @ params["w3"] + params["b3"]


if __name__ == "__main__":
    key = jax.random.PRNGKey(0)
    key, kx1, kx2, kx3 = jax.random.split(key, 4)

    input_dim = 51
    params = init_params(key, input_dim=input_dim)

    # Small batch: single tile, full-extent blocks.
    B1 = 8
    x1 = jax.random.normal(kx1, (B1, input_dim), jnp.float32)
    out1 = jax.block_until_ready(responsibility_mlp(x1, params))
    ref1 = responsibility_mlp_ref(x1, params)
    assert out1.shape == (B1, 1), out1.shape
    assert jnp.allclose(out1, ref1, atol=1e-4, rtol=1e-4), "mismatch (single tile)"

    # Ragged batch with small tm_max: exercises the batch grid, balanced tiling
    # (TM=128, 3 tiles, <128 rows of padding), resident weights.
    B2 = 300
    x2 = jax.random.normal(kx2, (B2, input_dim), jnp.float32)
    out2 = jax.block_until_ready(responsibility_mlp(x2, params, tm_max=128))
    ref2 = responsibility_mlp_ref(x2, params)
    assert out2.shape == (B2, 1), out2.shape
    assert jnp.allclose(out2, ref2, atol=1e-4, rtol=1e-4), "mismatch (tiled)"

    # bf16 input path: bf16 MXU operands, f32 accumulation; looser tolerance.
    B3 = 64
    x3 = jax.random.normal(kx3, (B3, input_dim), jnp.float32)
    out3 = jax.block_until_ready(responsibility_mlp(x3.astype(jnp.bfloat16), params))
    ref3 = responsibility_mlp_ref(x3, params)
    assert out3.shape == (B3, 1), out3.shape
    assert jnp.allclose(out3, ref3, atol=5e-2, rtol=5e-2), "mismatch (bf16)"

    print("KERNEL_OK")
</pallas_src>

<mosaic_0001>
module attributes {stable_mosaic.version = 11 : i64} {
  func.func @_mlp_kernel(%arg0: i32, %arg1: memref<8x51xf32, #tpu.memory_space<vmem>>, %arg2: memref<32x51xf32, #tpu.memory_space<vmem>>, %arg3: memref<32x1xf32, #tpu.memory_space<vmem>>, %arg4: memref<16x32xf32, #tpu.memory_space<vmem>>, %arg5: memref<16x1xf32, #tpu.memory_space<vmem>>, %arg6: memref<8x16xf32, #tpu.memory_space<vmem>>, %arg7: memref<1x1xf32, #tpu.memory_space<vmem>>, %arg8: memref<1x8xf32, #tpu.memory_space<vmem>>) attributes {dimension_semantics = [#tpu.dimension_semantics<parallel>], iteration_bounds = array<i64: 1>, scalar_prefetch = 0 : i64, scratch_operands = 0 : i64, tpu.core_type = #tpu.core_type<tc>, window_params = [{transform_indices = @transform_0, window_bounds = array<i64: 8, 51>}, {pipeline_mode = #tpu.pipeline_mode<synchronous>, transform_indices = @transform_1, window_bounds = array<i64: 32, 51>}, {pipeline_mode = #tpu.pipeline_mode<synchronous>, transform_indices = @transform_2, window_bounds = array<i64: 32, 1>}, {pipeline_mode = #tpu.pipeline_mode<synchronous>, transform_indices = @transform_3, window_bounds = array<i64: 16, 32>}, {pipeline_mode = #tpu.pipeline_mode<synchronous>, transform_indices = @transform_4, window_bounds = array<i64: 16, 1>}, {pipeline_mode = #tpu.pipeline_mode<synchronous>, transform_indices = @transform_5, window_bounds = array<i64: 8, 16>}, {pipeline_mode = #tpu.pipeline_mode<synchronous>, transform_indices = @transform_6, window_bounds = array<i64: 1, 1>}, {transform_indices = @transform_7, window_bounds = array<i64: 1, 8>}]} {
    %c0 = arith.constant 0 : index
    %c0_0 = arith.constant 0 : index
    %0 = vector.load %arg1[%c0, %c0_0] : memref<8x51xf32, #tpu.memory_space<vmem>>, vector<8x51xf32>
    %c0_1 = arith.constant 0 : index
    %c0_2 = arith.constant 0 : index
    %1 = vector.load %arg2[%c0_1, %c0_2] : memref<32x51xf32, #tpu.memory_space<vmem>>, vector<32x51xf32>
    %cst = arith.constant dense<0.000000e+00> : vector<32x8xf32>
    %2 = tpu.matmul %1, %0, %cst {dimension_numbers = #tpu.dot_dimension_numbers<[1], [1], [0], [0], [0, 0, 1, 0], [], []>} : vector<32x51xf32>, vector<8x51xf32>, vector<32x8xf32> -> vector<32x8xf32>
    %c0_3 = arith.constant 0 : index
    %c0_4 = arith.constant 0 : index
    %3 = vector.load %arg3[%c0_3, %c0_4] : memref<32x1xf32, #tpu.memory_space<vmem>>, vector<32x1xf32>
    %4 = vector.broadcast %3 : vector<32x1xf32> to vector<32x8xf32>
    %5 = arith.addf %2, %4 : vector<32x8xf32>
    %cst_5 = arith.constant 0.000000e+00 : f32
    %6 = vector.broadcast %cst_5 : f32 to vector<32x8xf32>
    %7 = arith.maximumf %5, %6 : vector<32x8xf32>
    %c0_6 = arith.constant 0 : index
    %c0_7 = arith.constant 0 : index
    %8 = vector.load %arg4[%c0_6, %c0_7] : memref<16x32xf32, #tpu.memory_space<vmem>>, vector<16x32xf32>
    %cst_8 = arith.constant dense<0.000000e+00> : vector<16x8xf32>
    %9 = tpu.matmul %8, %7, %cst_8 {dimension_numbers = #tpu.dot_dimension_numbers<[1], [0], [0], [1], [0, 0, 1, 1], [], []>} : vector<16x32xf32>, vector<32x8xf32>, vector<16x8xf32> -> vector<16x8xf32>
    %c0_9 = arith.constant 0 : index
    %c0_10 = arith.constant 0 : index
    %10 = vector.load %arg5[%c0_9, %c0_10] : memref<16x1xf32, #tpu.memory_space<vmem>>, vector<16x1xf32>
    %11 = vector.broadcast %10 : vector<16x1xf32> to vector<16x8xf32>
    %12 = arith.addf %9, %11 : vector<16x8xf32>
    %cst_11 = arith.constant 0.000000e+00 : f32
    %13 = vector.broadcast %cst_11 : f32 to vector<16x8xf32>
    %14 = arith.maximumf %12, %13 : vector<16x8xf32>
    %c0_12 = arith.constant 0 : index
    %c0_13 = arith.constant 0 : index
    %15 = vector.load %arg6[%c0_12, %c0_13] : memref<8x16xf32, #tpu.memory_space<vmem>>, vector<8x16xf32>
    %cst_14 = arith.constant dense<0.000000e+00> : vector<8x8xf32>
    %16 = tpu.matmul %15, %14, %cst_14 {dimension_numbers = #tpu.dot_dimension_numbers<[1], [0], [0], [1], [0, 0, 1, 1], [], []>} : vector<8x16xf32>, vector<16x8xf32>, vector<8x8xf32> -> vector<8x8xf32>
    %17 = vector.extract_strided_slice %16 {offsets = [0, 0], sizes = [1, 8], strides = [1, 1]} : vector<8x8xf32> to vector<1x8xf32>
    %c0_15 = arith.constant 0 : index
    %c0_16 = arith.constant 0 : index
    %18 = vector.load %arg7[%c0_15, %c0_16] : memref<1x1xf32, #tpu.memory_space<vmem>>, vector<1x1xf32>
    %19 = vector.broadcast %18 : vector<1x1xf32> to vector<1x8xf32>
    %20 = arith.addf %17, %19 : vector<1x8xf32>
    %c0_17 = arith.constant 0 : index
    %c0_18 = arith.constant 0 : index
    %21 = vector.load %arg8[%c0_17, %c0_18] : memref<1x8xf32, #tpu.memory_space<vmem>>, vector<1x8xf32>
    tpu.vector_store %arg8[%c0_17, %c0_18], %20 {strides = array<i32>} : memref<1x8xf32, #tpu.memory_space<vmem>>, vector<1x8xf32>,
    return
  }
  func.func @transform_0(%arg0: i32) -> (i32, i32) {
    %c0_i32 = arith.constant 0 : i32
    %c0_i32_0 = arith.constant 0 : i32
    return %arg0, %c0_i32 : i32, i32
  }
  func.func @transform_1(%arg0: i32) -> (i32, i32) {
    %c0_i32 = arith.constant 0 : i32
    %c0_i32_0 = arith.constant 0 : i32
    %c0_i32_1 = arith.constant 0 : i32
    return %c0_i32, %c0_i32_0 : i32, i32
  }
  func.func @transform_2(%arg0: i32) -> (i32, i32) {
    %c0_i32 = arith.constant 0 : i32
    %c0_i32_0 = arith.constant 0 : i32
    %c0_i32_1 = arith.constant 0 : i32
    return %c0_i32, %c0_i32_0 : i32, i32
  }
  func.func @transform_3(%arg0: i32) -> (i32, i32) {
    %c0_i32 = arith.constant 0 : i32
    %c0_i32_0 = arith.constant 0 : i32
    %c0_i32_1 = arith.constant 0 : i32
    return %c0_i32, %c0_i32_0 : i32, i32
  }
  func.func @transform_4(%arg0: i32) -> (i32, i32) {
    %c0_i32 = arith.constant 0 : i32
    %c0_i32_0 = arith.constant 0 : i32
    %c0_i32_1 = arith.constant 0 : i32
    return %c0_i32, %c0_i32_0 : i32, i32
  }
  func.func @transform_5(%arg0: i32) -> (i32, i32) {
    %c0_i32 = arith.constant 0 : i32
    %c0_i32_0 = arith.constant 0 : i32
    %c0_i32_1 = arith.constant 0 : i32
    return %c0_i32, %c0_i32_0 : i32, i32
  }
  func.func @transform_6(%arg0: i32) -> (i32, i32) {
    %c0_i32 = arith.constant 0 : i32
    %c0_i32_0 = arith.constant 0 : i32
    %c0_i32_1 = arith.constant 0 : i32
    return %c0_i32, %c0_i32_0 : i32, i32
  }
  func.func @transform_7(%arg0: i32) -> (i32, i32) {
    %c0_i32 = arith.constant 0 : i32
    %c0_i32_0 = arith.constant 0 : i32
    return %c0_i32, %arg0 : i32, i32
  }
}

</mosaic_0001>

<bundles_post_ra>
// kernel: tpu_custom_call.1
= control target key start
LH: loop header
LB: loop body
LE: loop exit
PB: predicated region body
PF: predicated region fallthrough
CT: control target
= control target key end

     0   :  { %s576_s0 = inlined_call_operand.hbm [shape: f32[8,51], index: 0, kind: input, shape index: {}]   ;;  %s577_s1 = inlined_call_operand.vmem [shape: f32[32,51], index: 1, kind: input, shape index: {}]   ;;  %s578_s2 = inlined_call_operand.vmem [shape: f32[32,1], index: 2, kind: input, shape index: {}]   ;;  %s579_s3 = inlined_call_operand.vmem [shape: f32[16,32], index: 3, kind: input, shape index: {}]   ;;  %s580_s4 = inlined_call_operand.vmem [shape: f32[16,1], index: 4, kind: input, shape index: {}]   ;;  %s581_s5 = inlined_call_operand.vmem [shape: f32[8,16], index: 5, kind: input, shape index: {}]   ;;  %s582_s6 = inlined_call_operand.<no memory space> [shape: f32[1,1], index: 6, kind: input, shape index: {}]   ;;  %s583_s7 = inlined_call_operand.hbm [shape: f32[1,8], index: 7, kind: output, shape index: {}]  }
   0x1   :  { %v12_v0 = vstv %s582_s6 }
   0x2   :  { %13 = vst [vmem:[#allocation2] sm:$0x1] %v12_v0 }
   0x3   :  { %14 = vsyncpa [#allocation4], 0 }
   0x4   :  { %15 = vsyncpa [#allocation5], 0  ;;  %s475_s26 = smov [#allocation3]  }
   0x5   :  { %s22_s27 = sshll.u32 %s475_s26, 4  ;;  %s23_s27 = int_to_ptr.vmem [resolvable:$true] %s22_s27 }
   0x6   :  { %s439_s28 = scalar_lea.vmem %s23_s27, 128  ;;  %p444_p1 = scmp.lt.s32.totalorder %s23_s27, %s23_s27 }
   0x7   :  { %p440_p0 = scmp.ne.s32.totalorder %s23_s27, %s439_s28  ;;  %p445_p2 = scmp.lt.s32.totalorder %s439_s28, %s439_s28 }
   0x9   :  { %p446_p3 = por %p445_p2, %p444_p1 }
   0xb   :  { %p447_p4 = pnand %p446_p3, %p440_p0 }
   0xd   :  { %450 = shalt.err (!%p447_p4)
}
   0xe   :  { %25 = dma.hbm_to_vmem [thread:$0]  %s576_s0, 128, %s23_s27, [#allocation4]  }
   0xf   :  { %471 = dma.done.wait [#allocation4], 128  }
  0x10   :  { %472 = vsyncadd [#allocation4], 4294967168  ;;  %v476_v1 = vmov 0   ;;  %vm70_vm0 = vcmask 416768   ;;  %v41_v2 = vld [vmem:[#allocation3] sm:$0xff]  ;;  %v49_v4 = vld [vmem:[%s578_s2 + $0x18] sm:$0xff]  ;;  %v354_v42 = vlaneseq }
  0x11   :  { %429 = vset.pattern.permute.xlu0 %v476_v1  ;;  %430 = vset.pattern.permute.xlu1 %v476_v1  ;;  %v42_v3 = vld [vmem:[%s577_s1] sm:$0xff]  ;;  %v43_v5 = vld [vmem:[%s577_s1 + $0x8] sm:$0xff]  ;;  %v44_v7 = vld [vmem:[%s577_s1 + $0x10] sm:$0xff]  ;;  %vm189_vm1 = vcmask 261120   ;;  %v477_v32 = vmov 0.0   ;;  %vm478_vm2 = vmmov 0  }
  0x12   :  { %398 = vmatprep.subr.msk.mxu0 %vm70_vm0, %v41_v2  ;;  %400 = vmatprep.mubr.msk.f32.mxu0 %vm70_vm0, %v42_v3  ;;  %v47_v6 = vld [vmem:[%s578_s2 + $0x8] sm:$0xff]  ;;  %v48_v8 = vld [vmem:[%s578_s2 + $0x10] sm:$0xff]  ;;  %v46_v9 = vld [vmem:[%s578_s2] sm:$0xff]  ;;  %vm274_vm3 = vcmask 130048   ;;  %v355_v43 = vshrl.u32 %v354_v42, 7  ;;  %vm359_vm4 = vcmask 57344  }
  0x13   :  { %399 = vmatpush3.xpose.msk.msra.mxu0 %vm70_vm0, %v41_v2  ;;  %67 = vperm.xlu0 %429, %v49_v4   ;;  %v45_v10 = vld [vmem:[%s577_s1 + $0x18] sm:$0xff]  ;;  %v178_v11 = vld [vmem:[%s580_s4 + $0x8] sm:$0xff]  ;;  %v177_v12 = vld [vmem:[%s580_s4] sm:$0xff] }
  0x14   :  { %57 = vperm.xlu1 %430, %v47_v6   ;;  %v348_v13 = vld [vmem:[#allocation2] sm:$0x1]  ;;  %v176_v31 = vld [vmem:[%s579_s3 + $0x8] sm:$0xff]  ;;  %417 = vmatprep.subr.mxu0 %v477_v32  ;;  %v356_v44 = vsub.s32 0, %v355_v43 }
  0x15   :  { %v175_v14 = vld [vmem:[%s579_s3] sm:$0xff]  ;;  %s479_s3 = smov [#allocation6]  }
  0x16   :  { %401 = vmatmul.mubr.msk.f32.vlgmr.msra.gmra.mxu0 %vm70_vm0, %v43_v5  ;;  %414 = vmatprep.mubr.msk.f32.mxu1 %vm189_vm1, %v175_v14  ;;  %v273_v41 = vld [vmem:[%s581_s5] sm:$0xff]  ;;  %s367_s29 = sshll.u32 %s479_s3, 4  ;;  %s368_s29 = int_to_ptr.vmem [resolvable:$true] %s367_s29 }
  0x17   :  { %403 = vmatprep.mubr.msk.f32.mxu0 %vm70_vm0, %v44_v7  ;;  %62 = vperm.xlu0 %429, %v48_v8   ;;  %s451_s30 = scalar_lea.vmem %s368_s29, 16  ;;  %s455_s5 = scalar_lea.vmem %s368_s29, 32 }
  0x18   :  { %52 = vperm.xlu1 %430, %v46_v9   ;;  %p452_p5 = scmp.ne.s32.totalorder %s368_s29, %s451_s30  ;;  %p456_p6 = scmp.lt.s32.totalorder %s368_s29, %s368_s29 }
  0x19   :  { %p457_p7 = scmp.lt.s32.totalorder %s455_s5, %s451_s30 }
  0x1a   :  { %404 = vmatmul.mubr.msk.f32.gmra.mxu0 %vm70_vm0, %v45_v10 }
  0x1b   :  { %186 = vperm.xlu0 %429, %v178_v11   ;;  %421 = vmatprep.mubr.msk.f32.mxu0 %vm478_vm2, %v477_v32  ;;  %p458_p8 = por %p457_p7, %p456_p6 }
  0x1c   :  { %181 = vperm.xlu1 %430, %v177_v12  }
  0x1d   :  { %p459_p9 = pnand %p458_p8, %p452_p5 }
  0x1f   :  { %351 = vperm.xlu0 %429, %v348_v13  }
  0x8e   :  { %v68_v15 = vpop.permute.xlu0 %67 }
  0x8f   :  { %v58_v16 = vpop.permute.xlu1 %57 }
  0x92   :  { %v63_v20 = vpop.permute.xlu0 %62 }
  0x93   :  { %v53_v22 = vpop.permute.xlu1 %52 }
  0x96   :  { %v187_v33 = vpop.permute.xlu0 %186 }
  0x97   :  { %v182_v36 = vpop.permute.xlu1 %181 }
  0x9a   :  { %v352_v45 = vpop.permute.xlu0 %351 }
  0x9b   :  { %v357_v46 = vrot.slane %v352_v45, %v356_v44 }
  0xd6   :  { %v402_v17 = vpop.f32.mrf.mxu0 }
  0xd7   :  { %v158_v24 = vadd.f32 %v402_v17, %v58_v16 }
  0xd8   :  { %v152_v18 = vpop.f32.mrf.mxu0 }
  0xd9   :  { %v153_v27 = vadd.f32 %v152_v18, %v53_v22  ;;  %v172_v29 = vmax.f32 %v158_v24, 0.0 }
  0xda   :  { %v405_v19 = vpop.f32.mrf.mxu0 }
  0xdb   :  { %v168_v21 = vadd.f32 %v405_v19, %v68_v15  ;;  %v171_v30 = vmax.f32 %v153_v27, 0.0 }
  0xdc   :  { %v162_v23 = vpop.f32.mrf.mxu0 }
  0xdd   :  { %v174_v25 = vmax.f32 %v168_v21, 0.0  ;;  %v163_v26 = vadd.f32 %v162_v23, %v63_v20 }
  0xdf   :  { %v173_v28 = vmax.f32 %v163_v26, 0.0  ;;  %406 = vmatprep.subr.mxu1 %v174_v25 }
  0xe0   :  { %407 = vmatpush3.msra.mxu1 %v174_v25 }
  0xe1   :  { %408 = vmatprep.subr.mxu1 %v173_v28 }
  0xe2   :  { %409 = vmatpush3.msra.mxu1 %v173_v28 }
  0xe3   :  { %410 = vmatprep.subr.mxu1 %v172_v29 }
  0xe4   :  { %411 = vmatpush3.msra.mxu1 %v172_v29 }
  0xe5   :  { %412 = vmatprep.subr.mxu1 %v171_v30 }
  0xe6   :  { %413 = vmatpush3.msra.mxu1 %v171_v30 }
  0xe7   :  { %415 = vmatmul.mubr.msk.f32.vlgmr.msra.gmra.mxu1 %vm189_vm1, %v176_v31 }
 0x1a7   :  { %v416_v34 = vpop.f32.mrf.mxu1 }
 0x1a8   :  { %v268_v35 = vadd.f32 %v416_v34, %v187_v33 }
 0x1a9   :  { %v262_v37 = vpop.f32.mrf.mxu1 }
 0x1aa   :  { %v272_v38 = vmax.f32 %v268_v35, 0.0  ;;  %v263_v39 = vadd.f32 %v262_v37, %v182_v36 }
 0x1ac   :  { %v271_v40 = vmax.f32 %v263_v39, 0.0  ;;  %418 = vmatpush3.msra.mxu0 %v272_v38 }
 0x1ad   :  { %419 = vmatprep.subr.mxu0 %v477_v32 }
 0x1ae   :  { %420 = vmatpush3.msra.mxu0 %v271_v40 }
 0x1af   :  { %422 = vmatmul.mubr.msk.f32.vlgmr.msra.gmra.mxu0 %vm274_vm3, %v273_v41 }
 0x26f   :  { %v344_v47 = vpop.f32.mrf.mxu0 }
 0x270   :  { %v358_v48 = vadd.f32 %v357_v46, %v344_v47 }
 0x271   :  { %v423_v49 = vpop.f32.mrf.mxu0 }
 0x272   :  { %360 = vst.msk [vmem:[#allocation6] sm:$0x1] %vm359_vm4, %v358_v48 }
 0x273   :  { %462 = shalt.err (!%p459_p9)
}
 0x274   :  { %370 = dma.vmem_to_hbm [thread:$0]  %s368_s29, 16, %s583_s7, [#allocation5]  }
 0x275   :  { %473 = dma.done.wait [#allocation5], 16  }
 0x276   :  { %474 = vsyncadd [#allocation5], 4294967280 }
 0x277   :  { %374 = vsyncpa [#allocation4], 1 }
 0x278   :  { %375 = vsyncpa [#allocation5], 1 }

</bundles_post_ra>
